<compile_context>
chip_gen: v7x
topology: tpu7x:2x2x1
jax: 0.10.0
libtpu: 0.0.40
codegen_flags: <defaults>
</compile_context>

<pallas_src>
import functools

import jax
import jax.numpy as jnp
from jax import lax
from jax.experimental import pallas as pl
from jax.experimental.pallas import tpu as pltpu


def q_critic_kernel(x_ref, w1_ref, b1_ref, w2_ref, b2_ref, o_ref, *, inv_hidden):
    # ----- fc1 + ReLU (hidden dim is 128-padded; padded cols are exactly 0) -----
    x = x_ref[...]                                                  # [TB, D]
    h = jnp.dot(x, w1_ref[...], preferred_element_type=jnp.float32)  # [TB, 128]
    h = jnp.maximum(h + b1_ref[...], 0.0)

    # ----- LayerNorm over the true hidden width (one-pass stats), eps = 1e-5 -----
    s1 = jnp.sum(h, axis=-1, keepdims=True)
    s2 = jnp.sum(h * h, axis=-1, keepdims=True)
    mean = s1 * inv_hidden
    var = s2 * inv_hidden - mean * mean
    hn = (h - mean) * lax.rsqrt(var + 1e-5)

    # ----- fc2 (gamma folded into w2, beta folded into b2; padded rows are 0) -----
    out = jnp.dot(hn, w2_ref[...], preferred_element_type=jnp.float32)
    o_ref[...] = (out + b2_ref[...]).astype(o_ref.dtype)


def q_critic_forward(x, w1, b1, gamma, beta, w2, b2, *, block_b=512):
    B, D = x.shape
    H = w1.shape[1]
    n_out = w2.shape[1]
    HP = 128 * pl.cdiv(H, 128)          # lane-dense hidden width

    # Fold LayerNorm affine into fc2:  (c*g + beta) @ w2 + b2 = c @ (g.T*w2) + (beta@w2 + b2)
    w2f = w2 * gamma.reshape(H, 1)
    b2f = beta.reshape(1, H) @ w2 + b2.reshape(1, n_out)

    # Zero-pad hidden dim to HP (zeros survive ReLU; contribute 0 to sums and fc2).
    w1p = jnp.zeros((D, HP), w1.dtype).at[:, :H].set(w1)
    b1p = jnp.zeros((1, HP), b1.dtype).at[:, :H].set(b1.reshape(1, H))
    w2p = jnp.zeros((HP, n_out), w2.dtype).at[:H, :].set(w2f)

    # Batch tiling: multiple-of-8 row tile, large when B is large (amortizes the
    # per-step overhead); pad B up to a whole number of tiles.
    TB = min(block_b, 8 * pl.cdiv(B, 8))
    Bp = TB * pl.cdiv(B, TB)
    xp = x if Bp == B else jnp.zeros((Bp, D), x.dtype).at[:B].set(x)

    out = pl.pallas_call(
        functools.partial(q_critic_kernel, inv_hidden=1.0 / H),
        out_shape=jax.ShapeDtypeStruct((Bp, n_out), jnp.float32),
        grid_spec=pltpu.PrefetchScalarGridSpec(
            num_scalar_prefetch=0,
            grid=(Bp // TB,),
            in_specs=[
                pl.BlockSpec((TB, D), lambda i: (i, 0)),      # x: tiled over batch
                pl.BlockSpec((D, HP), lambda i: (0, 0)),      # w1: resident
                pl.BlockSpec((1, HP), lambda i: (0, 0)),      # b1: resident
                pl.BlockSpec((HP, n_out), lambda i: (0, 0)),  # w2 (gamma folded): resident
                pl.BlockSpec((1, n_out), lambda i: (0, 0)),   # b2 (beta folded): resident
            ],
            out_specs=pl.BlockSpec((TB, n_out), lambda i: (i, 0)),
        ),
        compiler_params=pltpu.CompilerParams(
            dimension_semantics=("parallel",)),               # shard batch across TCs (v7x)
    )(xp, w1p, b1p, w2p, b2f)
    return out[:B]


def init_params(key, state_dim, hidden=100, n_out=2):
    """Deterministic init mimicking PyTorch nn.Linear default (U[-1/sqrt(fan_in), ...])
    and nn.LayerNorm default (weight=1, bias=0)."""
    k1, k2, k3, k4 = jax.random.split(key, 4)
    bound1 = 1.0 / jnp.sqrt(state_dim)
    bound2 = 1.0 / jnp.sqrt(hidden)
    w1 = jax.random.uniform(k1, (state_dim, hidden), jnp.float32, -bound1, bound1)
    b1 = jax.random.uniform(k2, (1, hidden), jnp.float32, -bound1, bound1)
    w2 = jax.random.uniform(k3, (hidden, n_out), jnp.float32, -bound2, bound2)
    b2 = jax.random.uniform(k4, (1, n_out), jnp.float32, -bound2, bound2)
    gamma = jnp.ones((1, hidden), jnp.float32)
    beta = jnp.zeros((1, hidden), jnp.float32)
    return w1, b1, gamma, beta, w2, b2


def reference_forward(x, w1, b1, gamma, beta, w2, b2):
    h = jnp.maximum(x @ w1 + b1, 0.0)
    mean = jnp.mean(h, axis=-1, keepdims=True)
    var = jnp.mean((h - mean) ** 2, axis=-1, keepdims=True)
    hn = (h - mean) / jnp.sqrt(var + 1e-5) * gamma + beta
    return hn @ w2 + b2


if __name__ == "__main__":
    key = jax.random.PRNGKey(0)
    k_x, k_x2, k_p = jax.random.split(key, 3)

    STATE_DIM = 32
    params = init_params(k_p, STATE_DIM)

    # Small batch (matches module usage).
    B = 8
    x = jax.random.normal(k_x, (B, STATE_DIM), jnp.float32)
    out = jax.block_until_ready(q_critic_forward(x, *params))
    ref = reference_forward(x, *params)
    assert out.shape == (B, 2), out.shape
    assert jnp.allclose(out, ref, atol=1e-4, rtol=1e-4), jnp.max(jnp.abs(out - ref))

    # Non-multiple-of-8 batch exercises the padding/slicing path.
    B2 = 37
    x2 = jax.random.normal(k_x2, (B2, STATE_DIM), jnp.float32)
    out2 = jax.block_until_ready(q_critic_forward(x2, *params))
    ref2 = reference_forward(x2, *params)
    assert out2.shape == (B2, 2), out2.shape
    assert jnp.allclose(out2, ref2, atol=1e-4, rtol=1e-4), jnp.max(jnp.abs(out2 - ref2))

    print("KERNEL_OK")
</pallas_src>

<mosaic_0001>
module attributes {stable_mosaic.version = 11 : i64} {
  func.func @q_critic_kernel(%arg0: i32, %arg1: memref<8x32xf32, #tpu.memory_space<vmem>>, %arg2: memref<32x128xf32, #tpu.memory_space<vmem>>, %arg3: memref<1x128xf32, #tpu.memory_space<vmem>>, %arg4: memref<128x2xf32, #tpu.memory_space<vmem>>, %arg5: memref<1x2xf32, #tpu.memory_space<vmem>>, %arg6: memref<8x2xf32, #tpu.memory_space<vmem>>) attributes {dimension_semantics = [#tpu.dimension_semantics<parallel>], iteration_bounds = array<i64: 1>, scalar_prefetch = 0 : i64, scratch_operands = 0 : i64, tpu.core_type = #tpu.core_type<tc>, window_params = [{transform_indices = @transform_0, window_bounds = array<i64: 8, 32>}, {pipeline_mode = #tpu.pipeline_mode<synchronous>, transform_indices = @transform_1, window_bounds = array<i64: 32, 128>}, {pipeline_mode = #tpu.pipeline_mode<synchronous>, transform_indices = @transform_2, window_bounds = array<i64: 1, 128>}, {pipeline_mode = #tpu.pipeline_mode<synchronous>, transform_indices = @transform_3, window_bounds = array<i64: 128, 2>}, {pipeline_mode = #tpu.pipeline_mode<synchronous>, transform_indices = @transform_4, window_bounds = array<i64: 1, 2>}, {transform_indices = @transform_5, window_bounds = array<i64: 8, 2>}]} {
    %c0 = arith.constant 0 : index
    %c0_0 = arith.constant 0 : index
    %0 = vector.load %arg1[%c0, %c0_0] : memref<8x32xf32, #tpu.memory_space<vmem>>, vector<8x32xf32>
    %c0_1 = arith.constant 0 : index
    %c0_2 = arith.constant 0 : index
    %1 = vector.load %arg2[%c0_1, %c0_2] : memref<32x128xf32, #tpu.memory_space<vmem>>, vector<32x128xf32>
    %cst = arith.constant dense<0.000000e+00> : vector<8x128xf32>
    %2 = tpu.matmul %0, %1, %cst {dimension_numbers = #tpu.dot_dimension_numbers<[1], [0], [0], [1], [0, 0, 1, 1], [], []>} : vector<8x32xf32>, vector<32x128xf32>, vector<8x128xf32> -> vector<8x128xf32>
    %c0_3 = arith.constant 0 : index
    %c0_4 = arith.constant 0 : index
    %3 = vector.load %arg3[%c0_3, %c0_4] : memref<1x128xf32, #tpu.memory_space<vmem>>, vector<1x128xf32>
    %4 = vector.broadcast %3 : vector<1x128xf32> to vector<8x128xf32>
    %5 = arith.addf %2, %4 : vector<8x128xf32>
    %cst_5 = arith.constant 0.000000e+00 : f32
    %6 = vector.broadcast %cst_5 : f32 to vector<8x128xf32>
    %7 = arith.maximumf %5, %6 : vector<8x128xf32>
    %cst_6 = arith.constant dense<0.000000e+00> : vector<8xf32>
    %8 = vector.multi_reduction <add>, %7, %cst_6 [1] : vector<8x128xf32> to vector<8xf32>
    %9 = vector.shape_cast %8 : vector<8xf32> to vector<8x1xf32>
    %10 = arith.mulf %7, %7 : vector<8x128xf32>
    %cst_7 = arith.constant dense<0.000000e+00> : vector<8xf32>
    %11 = vector.multi_reduction <add>, %10, %cst_7 [1] : vector<8x128xf32> to vector<8xf32>
    %12 = vector.shape_cast %11 : vector<8xf32> to vector<8x1xf32>
    %cst_8 = arith.constant 0.00999999977 : f32
    %13 = vector.broadcast %cst_8 : f32 to vector<8x1xf32>
    %14 = arith.mulf %9, %13 : vector<8x1xf32>
    %cst_9 = arith.constant 0.00999999977 : f32
    %15 = vector.broadcast %cst_9 : f32 to vector<8x1xf32>
    %16 = arith.mulf %12, %15 : vector<8x1xf32>
    %17 = arith.mulf %14, %14 : vector<8x1xf32>
    %18 = arith.subf %16, %17 : vector<8x1xf32>
    %19 = vector.broadcast %14 : vector<8x1xf32> to vector<8x128xf32>
    %20 = arith.subf %7, %19 : vector<8x128xf32>
    %cst_10 = arith.constant 9.99999974E-6 : f32
    %21 = vector.broadcast %cst_10 : f32 to vector<8x1xf32>
    %22 = arith.addf %18, %21 : vector<8x1xf32>
    %23 = math.rsqrt %22 : vector<8x1xf32>
    %24 = vector.broadcast %23 : vector<8x1xf32> to vector<8x128xf32>
    %25 = arith.mulf %20, %24 : vector<8x128xf32>
    %c0_11 = arith.constant 0 : index
    %c0_12 = arith.constant 0 : index
    %26 = vector.load %arg4[%c0_11, %c0_12] : memref<128x2xf32, #tpu.memory_space<vmem>>, vector<128x2xf32>
    %cst_13 = arith.constant dense<0.000000e+00> : vector<8x2xf32>
    %27 = tpu.matmul %25, %26, %cst_13 {dimension_numbers = #tpu.dot_dimension_numbers<[1], [0], [0], [1], [0, 0, 1, 1], [], []>} : vector<8x128xf32>, vector<128x2xf32>, vector<8x2xf32> -> vector<8x2xf32>
    %c0_14 = arith.constant 0 : index
    %c0_15 = arith.constant 0 : index
    %28 = vector.load %arg5[%c0_14, %c0_15] : memref<1x2xf32, #tpu.memory_space<vmem>>, vector<1x2xf32>
    %29 = vector.broadcast %28 : vector<1x2xf32> to vector<8x2xf32>
    %30 = arith.addf %27, %29 : vector<8x2xf32>
    %c0_16 = arith.constant 0 : index
    %c0_17 = arith.constant 0 : index
    %31 = vector.load %arg6[%c0_16, %c0_17] : memref<8x2xf32, #tpu.memory_space<vmem>>, vector<8x2xf32>
    tpu.vector_store %arg6[%c0_16, %c0_17], %30 {strides = array<i32>} : memref<8x2xf32, #tpu.memory_space<vmem>>, vector<8x2xf32>,
    return
  }
  func.func @transform_0(%arg0: i32) -> (i32, i32) {
    %c0_i32 = arith.constant 0 : i32
    %c0_i32_0 = arith.constant 0 : i32
    return %arg0, %c0_i32 : i32, i32
  }
  func.func @transform_1(%arg0: i32) -> (i32, i32) {
    %c0_i32 = arith.constant 0 : i32
    %c0_i32_0 = arith.constant 0 : i32
    %c0_i32_1 = arith.constant 0 : i32
    return %c0_i32, %c0_i32_0 : i32, i32
  }
  func.func @transform_2(%arg0: i32) -> (i32, i32) {
    %c0_i32 = arith.constant 0 : i32
    %c0_i32_0 = arith.constant 0 : i32
    %c0_i32_1 = arith.constant 0 : i32
    return %c0_i32, %c0_i32_0 : i32, i32
  }
  func.func @transform_3(%arg0: i32) -> (i32, i32) {
    %c0_i32 = arith.constant 0 : i32
    %c0_i32_0 = arith.constant 0 : i32
    %c0_i32_1 = arith.constant 0 : i32
    return %c0_i32, %c0_i32_0 : i32, i32
  }
  func.func @transform_4(%arg0: i32) -> (i32, i32) {
    %c0_i32 = arith.constant 0 : i32
    %c0_i32_0 = arith.constant 0 : i32
    %c0_i32_1 = arith.constant 0 : i32
    return %c0_i32, %c0_i32_0 : i32, i32
  }
  func.func @transform_5(%arg0: i32) -> (i32, i32) {
    %c0_i32 = arith.constant 0 : i32
    %c0_i32_0 = arith.constant 0 : i32
    return %arg0, %c0_i32 : i32, i32
  }
}

</mosaic_0001>

<bundles_post_ra>
// kernel: tpu_custom_call.1
= control target key start
LH: loop header
LB: loop body
LE: loop exit
PB: predicated region body
PF: predicated region fallthrough
CT: control target
= control target key end

     0   :  { %v325_v0 = vmov 0.0|0.0   ;;  %vm326_vm0 = vmmov 0   ;;  %v327_v4 = vmov 0.0   ;;  %vm32_vm1 = vcmask 261120   ;;  %s440_s1 = inlined_call_operand.vmem [shape: f32[32,128], index: 1, kind: input, shape index: {}]   ;;  %s441_s0 = inlined_call_operand.vmem [shape: f32[8,32], index: 0, kind: input, shape index: {}]   ;;  %s442_s3 = inlined_call_operand.vmem [shape: f32[128,2], index: 3, kind: input, shape index: {}]   ;;  %s443_s2 = inlined_call_operand.vmem [shape: f32[1,128], index: 2, kind: input, shape index: {}]   ;;  %s444_s4 = inlined_call_operand.vmem [shape: f32[1,2], index: 4, kind: input, shape index: {}]   ;;  %s445_s5 = inlined_call_operand.vmem [shape: f32[8,2], index: 5, kind: output, shape index: {}]  }
   0x1   :  { %290 = vmatprep.subr.bf16.mxu0 %v325_v0  ;;  %v21_v1 = vld [vmem:[%s440_s1] sm:$0xff]  ;;  %v22_v2 = vld [vmem:[%s440_s1 + $0x8] sm:$0xff]  ;;  %v23_v3 = vld [vmem:[%s440_s1 + $0x10] sm:$0xff]  ;;  %252 = vmatprep.mubr.msk.f32.mxu0 %vm326_vm0, %v327_v4  ;;  %vm213_vm2 = vcmask 15360  }
   0x2   :  { %v291_v5 = vpack.c.bf16 %v22_v2, %v21_v1  ;;  %v24_v6 = vld [vmem:[%s440_s1 + $0x18] sm:$0xff]  ;;  %296 = vmatprep.subr.bf16.mxu1 %v325_v0  ;;  %287 = vmatprep.mubr.msk.f32.mxu1 %vm326_vm0, %v327_v4  ;;  %v20_v8 = vld [vmem:[%s441_s0] sm:$0xff]  ;;  %v121_v10 = vld [vmem:[%s442_s3 + $0x8] sm:$0xff] }
   0x3   :  { %v294_v7 = vpack.c.bf16 %v24_v6, %v23_v3  ;;  %v120_v9 = vld [vmem:[%s442_s3] sm:$0xff]  ;;  %v122_v11 = vld [vmem:[%s442_s3 + $0x10] sm:$0xff]  ;;  %v123_v13 = vld [vmem:[%s442_s3 + $0x18] sm:$0xff] }
   0x4   :  { %292 = vmatpush3.bf16.msra.mxu0 %v291_v5  ;;  %v297_v12 = vpack.c.bf16 %v121_v10, %v120_v9  ;;  %v300_v14 = vpack.c.bf16 %v123_v13, %v122_v11  ;;  %v219_v15 = vld [vmem:[%s443_s2] ss:$0 sm:$0xff]  ;;  %v125_v22 = vld [vmem:[%s442_s3 + $0x28] sm:$0xff]  ;;  %v126_v24 = vld [vmem:[%s442_s3 + $0x30] sm:$0xff] }
   0x5   :  { %293 = vmatprep.subr.bf16.mxu0 %v325_v0  ;;  %v124_v21 = vld [vmem:[%s442_s3 + $0x20] sm:$0xff]  ;;  %v127_v25 = vld [vmem:[%s442_s3 + $0x38] sm:$0xff]  ;;  %v129_v28 = vld [vmem:[%s442_s3 + $0x48] sm:$0xff] }
   0x6   :  { %298 = vmatpush3.bf16.msra.mxu1 %v297_v12  ;;  %v303_v23 = vpack.c.bf16 %v125_v22, %v124_v21  ;;  %v306_v26 = vpack.c.bf16 %v127_v25, %v126_v24  ;;  %v128_v27 = vld [vmem:[%s442_s3 + $0x40] sm:$0xff]  ;;  %v130_v30 = vld [vmem:[%s442_s3 + $0x50] sm:$0xff]  ;;  %v131_v31 = vld [vmem:[%s442_s3 + $0x58] sm:$0xff] }
   0x7   :  { %299 = vmatprep.subr.bf16.mxu1 %v325_v0  ;;  %v309_v29 = vpack.c.bf16 %v129_v28, %v128_v27  ;;  %v312_v32 = vpack.c.bf16 %v131_v31, %v130_v30  ;;  %v132_v33 = vld [vmem:[%s442_s3 + $0x60] sm:$0xff]  ;;  %v133_v34 = vld [vmem:[%s442_s3 + $0x68] sm:$0xff]  ;;  %v134_v36 = vld [vmem:[%s442_s3 + $0x70] sm:$0xff] }
   0x8   :  { %295 = vmatpush3.bf16.msra.mxu0 %v294_v7  ;;  %v315_v35 = vpack.c.bf16 %v133_v34, %v132_v33  ;;  %v135_v37 = vld [vmem:[%s442_s3 + $0x78] sm:$0xff]  ;;  %v221_v49 = vld [vmem:[%s444_s4] ss:$0 sm:$0xff] }
   0x9   :  { %v318_v38 = vpack.c.bf16 %v135_v37, %v134_v36 }
   0xa   :  { %301 = vmatpush3.bf16.msra.mxu1 %v300_v14 }
   0xb   :  { %253 = vmatmul.mubr.msk.f32.vlgmr.msra.gmra.mrb[0].mxu0 %vm32_vm1, %v20_v8  ;;  %302 = vmatprep.subr.bf16.mxu1 %v325_v0 }
   0xe   :  { %304 = vmatpush3.bf16.msra.mxu1 %v303_v23 }
   0xf   :  { %305 = vmatprep.subr.bf16.mxu1 %v325_v0 }
  0x12   :  { %307 = vmatpush3.bf16.msra.mxu1 %v306_v26 }
  0x13   :  { %308 = vmatprep.subr.bf16.mxu1 %v325_v0 }
  0x16   :  { %310 = vmatpush3.bf16.msra.mxu1 %v309_v29 }
  0x17   :  { %311 = vmatprep.subr.bf16.mxu1 %v325_v0 }
  0x1a   :  { %313 = vmatpush3.bf16.msra.mxu1 %v312_v32 }
  0x1b   :  { %314 = vmatprep.subr.bf16.mxu1 %v325_v0 }
  0x1e   :  { %316 = vmatpush3.bf16.msra.mxu1 %v315_v35 }
  0x1f   :  { %317 = vmatprep.subr.bf16.mxu1 %v325_v0 }
  0x22   :  { %319 = vmatpush3.bf16.msra.mxu1 %v318_v38 }
  0xde   :  { %v102_v16 = vpop.f32.mrb[0].mxu0 }
  0xdf   :  { %v103_v17 = vadd.f32 %v219_v15, %v102_v16  ;;  %v254_v18 = vpop.f32.mrb[1].mxu0 }
  0xe1   :  { %v106_v19 = vmax.f32 %v103_v17, 0.0 }
  0xe3   :  { %107 = vadd.xlane.f32.xlu0 %v106_v19  ;;  %v109_v20 = vmul.f32 %v106_v19, %v106_v19 }
  0xe7   :  { %110 = vadd.xlane.f32.xlu0 %v109_v20 }
 0x170   :  { %v108_v39 = vpop.xlane.xlu0 %107 }
 0x171   :  { %v112_v40 = vmul.f32 0.01, %v108_v39 }
 0x173   :  { %v114_v42 = vmul.f32 %v112_v40, %v112_v40  ;;  %v116_v46 = vsub.f32 %v106_v19, %v112_v40 }
 0x174   :  { %v111_v41 = vpop.xlane.xlu0 %110 }
 0x175   :  { %v113_v43 = vmul.f32 0.01, %v111_v41 }
 0x177   :  { %v115_v44 = vsub.f32 %v113_v43, %v114_v42 }
 0x179   :  { %v117_v45 = vadd.f32 1e-05, %v115_v44 }
 0x17b   :  { %323 = vrsqrt.f32 %v117_v45 }
 0x185   :  { %v324_v47 = vpop.eup %323 }
 0x186   :  { %v119_v48 = vmul.f32 %v324_v47, %v116_v46 }
 0x188   :  { %288 = vmatmul.mubr.f32.vlgmr.msra.gmra.mrb[0].mxu1 %v119_v48 }
 0x25b   :  { %v209_v50 = vpop.f32.mrb[0].mxu1 }
 0x25c   :  { %v210_v51 = vadd.f32 %v221_v49, %v209_v50  ;;  %v289_v52 = vpop.f32.mrb[1].mxu1 }
 0x25e   :  { %214 = vst.msk [vmem:[%s445_s5] sm:$0xff] %vm213_vm2, %v210_v51 }

</bundles_post_ra>
